<compile_context>
chip_gen: v7x
topology: tpu7x:2x2x1
jax: 0.10.0
libtpu: 0.0.40
codegen_flags: <defaults>
</compile_context>

<pallas_src>
import numpy as np
import jax
import jax.numpy as jnp
from jax.experimental import pallas as pl
from jax.experimental.pallas import tpu as pltpu


def _round_up(a, b):
    return -(-a // b) * b


def fsq_forward(z, levels, block_rows=1024):
    """FSQ.forward: returns (zhat, indices) matching the PyTorch semantics."""
    D = len(levels)
    assert z.shape[-1] == D
    assert 128 % D == 0, "packed layout requires the code dim to divide 128"
    cpr = 128 // D                        # codes per 128-lane row
    lead_shape = z.shape[:-1]

    E = int(np.prod(z.shape))             # total elements
    M = E // D                            # total codes
    R = _round_up(E, 128) // 128          # packed rows needed
    tile_r = min(block_rows, _round_up(max(R, 1), 8))
    R_pad = _round_up(R, tile_r)
    E_pad = R_pad * 128

    zf = z.reshape(-1).astype(jnp.float32)
    if E_pad > E:
        zf = jnp.pad(zf, (0, E_pad - E))
    z_packed = zf.reshape(R_pad, 128)

    # ---- host-side constant folding (float32, matching the torch math) ----
    eps = 1e-3
    lv = np.asarray(levels, np.int32)
    lvf = lv.astype(np.float32)
    half_l = ((lvf - 1.0) * (1.0 - eps) / 2.0).astype(np.float32)
    offset = np.where(lv % 2 == 0, 0.5, 0.0).astype(np.float32)
    shift = np.tan(offset / half_l).astype(np.float32)
    half_w = (lv // 2).astype(np.float32)
    inv_hw = (1.0 / half_w).astype(np.float32)
    basis = np.cumprod(np.array([1] + list(levels[:-1]), dtype=np.int64)
                       ).astype(np.float32)
    idx_bias = float(np.sum(half_w * basis))      # sum_d half_w[d] * basis[d]

    coef = np.stack([np.tile(shift, cpr), np.tile(half_l, cpr),
                     np.tile(offset, cpr), np.tile(inv_hw, cpr)],
                    axis=0).astype(np.float32)            # (4, 128)
    sel = np.zeros((128, cpr), np.float32)                # index selection mat
    for j in range(128):
        sel[j, j // D] = basis[j % D]

    coef = jnp.asarray(coef)
    sel = jnp.asarray(sel)

    def kernel(z_ref, coef_ref, sel_ref, zhat_ref, idx_ref):
        zt = z_ref[...]                                   # (tile_r, 128) f32
        shift_v = coef_ref[0:1, :]                        # (1, 128)
        half_l_v = coef_ref[1:2, :]
        offset_v = coef_ref[2:3, :]
        inv_hw_v = coef_ref[3:4, :]
        # bound(z) = tanh(z + shift) * half_l - offset  (EUP tanh, VPU fma)
        bounded = jnp.tanh(zt + shift_v) * half_l_v - offset_v
        q = jnp.round(bounded)                            # integer-valued f32
        # quantize: q / half_width  -> q * (1/half_width), precomputed on host
        zhat_ref[...] = (q * inv_hw_v).astype(zhat_ref.dtype)
        # codes_to_indices: per-code weighted sum over its D adjacent lanes,
        # done as one small MXU matmul; half_width*basis bias folded on host.
        idx = jnp.dot(q, sel_ref[...],
                      preferred_element_type=jnp.float32) + idx_bias
        idx_ref[...] = jnp.round(idx).astype(jnp.int32)

    zhat_p, idx_p = pl.pallas_call(
        kernel,
        out_shape=(jax.ShapeDtypeStruct((R_pad, 128), jnp.float32),
                   jax.ShapeDtypeStruct((R_pad, cpr), jnp.int32)),
        grid_spec=pltpu.PrefetchScalarGridSpec(
            num_scalar_prefetch=0,
            grid=(R_pad // tile_r,),
            in_specs=[
                pl.BlockSpec((tile_r, 128), lambda i: (i, 0)),  # packed z
                pl.BlockSpec((4, 128), lambda i: (0, 0)),       # coefficients
                pl.BlockSpec((128, cpr), lambda i: (0, 0)),     # index matrix
            ],
            out_specs=[
                pl.BlockSpec((tile_r, 128), lambda i: (i, 0)),  # packed zhat
                pl.BlockSpec((tile_r, cpr), lambda i: (i, 0)),  # indices
            ],
        ),
        compiler_params=pltpu.CompilerParams(
            dimension_semantics=("parallel",)),
    )(z_packed, coef, sel)

    zhat = zhat_p.reshape(-1)[:E].reshape(z.shape)
    indices = idx_p.reshape(-1)[:M].reshape(lead_shape)
    return zhat, indices


def _fsq_reference(z, levels):
    """Pure-JAX reference of the PyTorch forward (for correctness check)."""
    eps = 1e-3
    levels_i = jnp.asarray(levels, jnp.int32)
    levels_f = levels_i.astype(jnp.float32)
    half_l = (levels_f - 1.0) * (1.0 - eps) / 2.0
    offset = jnp.where(levels_i % 2 == 0, 0.5, 0.0)
    shift = jnp.tan(offset / half_l)
    bounded = jnp.tanh(z + shift) * half_l - offset
    q = jnp.round(bounded)
    half_w = (levels_i // 2).astype(jnp.float32)
    zhat = q / half_w
    basis = jnp.asarray(
        np.cumprod(np.array([1] + list(levels[:-1]), dtype=np.int64)),
        jnp.float32)
    idx = jnp.sum((zhat * half_w + half_w) * basis, axis=-1).astype(jnp.int32)
    return zhat, idx


if __name__ == "__main__":
    levels = [8, 5, 5, 5]          # dim = 4, n_codes = 1000
    B, N = 2, 32
    D = len(levels)

    key = jax.random.PRNGKey(0)
    z = jax.random.normal(key, (B, N, D), dtype=jnp.float32)

    zhat, indices = fsq_forward(z, levels)
    zhat = jax.block_until_ready(zhat)
    indices = jax.block_until_ready(indices)

    zhat_ref, idx_ref = _fsq_reference(z, levels)
    assert zhat.shape == (B, N, D) and zhat.dtype == jnp.float32
    assert indices.shape == (B, N) and indices.dtype == jnp.int32
    np.testing.assert_allclose(np.asarray(zhat), np.asarray(zhat_ref),
                               rtol=1e-5, atol=1e-5)
    np.testing.assert_array_equal(np.asarray(indices), np.asarray(idx_ref))

    print("KERNEL_OK")
</pallas_src>

<mosaic_0001>
module attributes {stable_mosaic.version = 11 : i64} {
  func.func @kernel(%arg0: i32, %arg1: memref<8x128xf32, #tpu.memory_space<vmem>>, %arg2: memref<4x128xf32, #tpu.memory_space<vmem>>, %arg3: memref<128x32xf32, #tpu.memory_space<vmem>>, %arg4: memref<8x128xf32, #tpu.memory_space<vmem>>, %arg5: memref<8x32xi32, #tpu.memory_space<vmem>>) attributes {dimension_semantics = [#tpu.dimension_semantics<parallel>], iteration_bounds = array<i64: 1>, scalar_prefetch = 0 : i64, scratch_operands = 0 : i64, tpu.core_type = #tpu.core_type<tc>, window_params = [{transform_indices = @transform_0, window_bounds = array<i64: 8, 128>}, {pipeline_mode = #tpu.pipeline_mode<synchronous>, transform_indices = @transform_1, window_bounds = array<i64: 4, 128>}, {pipeline_mode = #tpu.pipeline_mode<synchronous>, transform_indices = @transform_2, window_bounds = array<i64: 128, 32>}, {transform_indices = @transform_3, window_bounds = array<i64: 8, 128>}, {transform_indices = @transform_4, window_bounds = array<i64: 8, 32>}]} {
    %c0 = arith.constant 0 : index
    %c0_0 = arith.constant 0 : index
    %0 = vector.load %arg1[%c0, %c0_0] : memref<8x128xf32, #tpu.memory_space<vmem>>, vector<8x128xf32>
    %c0_1 = arith.constant 0 : index
    %c0_2 = arith.constant 0 : index
    %1 = vector.load %arg2[%c0_1, %c0_2] : memref<4x128xf32, #tpu.memory_space<vmem>>, vector<1x128xf32>
    %c1 = arith.constant 1 : index
    %c0_3 = arith.constant 0 : index
    %2 = vector.load %arg2[%c1, %c0_3] : memref<4x128xf32, #tpu.memory_space<vmem>>, vector<1x128xf32>
    %c2 = arith.constant 2 : index
    %c0_4 = arith.constant 0 : index
    %3 = vector.load %arg2[%c2, %c0_4] : memref<4x128xf32, #tpu.memory_space<vmem>>, vector<1x128xf32>
    %c3 = arith.constant 3 : index
    %c0_5 = arith.constant 0 : index
    %4 = vector.load %arg2[%c3, %c0_5] : memref<4x128xf32, #tpu.memory_space<vmem>>, vector<1x128xf32>
    %5 = vector.broadcast %1 : vector<1x128xf32> to vector<8x128xf32>
    %6 = arith.addf %0, %5 : vector<8x128xf32>
    %7 = math.tanh %6 : vector<8x128xf32>
    %8 = vector.broadcast %2 : vector<1x128xf32> to vector<8x128xf32>
    %9 = arith.mulf %7, %8 : vector<8x128xf32>
    %10 = vector.broadcast %3 : vector<1x128xf32> to vector<8x128xf32>
    %11 = arith.subf %9, %10 : vector<8x128xf32>
    %12 = math.roundeven %11 : vector<8x128xf32>
    %13 = vector.broadcast %4 : vector<1x128xf32> to vector<8x128xf32>
    %14 = arith.mulf %12, %13 : vector<8x128xf32>
    %c0_6 = arith.constant 0 : index
    %c0_7 = arith.constant 0 : index
    %15 = vector.load %arg4[%c0_6, %c0_7] : memref<8x128xf32, #tpu.memory_space<vmem>>, vector<8x128xf32>
    tpu.vector_store %arg4[%c0_6, %c0_7], %14 {strides = array<i32>} : memref<8x128xf32, #tpu.memory_space<vmem>>, vector<8x128xf32>,
    %c0_8 = arith.constant 0 : index
    %c0_9 = arith.constant 0 : index
    %16 = vector.load %arg3[%c0_8, %c0_9] : memref<128x32xf32, #tpu.memory_space<vmem>>, vector<128x32xf32>
    %cst = arith.constant dense<0.000000e+00> : vector<8x32xf32>
    %17 = tpu.matmul %12, %16, %cst {dimension_numbers = #tpu.dot_dimension_numbers<[1], [0], [0], [1], [0, 0, 1, 1], [], []>} : vector<8x128xf32>, vector<128x32xf32>, vector<8x32xf32> -> vector<8x32xf32>
    %cst_10 = arith.constant 5.000000e+02 : f32
    %18 = vector.broadcast %cst_10 : f32 to vector<8x32xf32>
    %19 = arith.addf %17, %18 : vector<8x32xf32>
    %20 = math.roundeven %19 : vector<8x32xf32>
    %21 = arith.fptosi %20 : vector<8x32xf32> to vector<8x32xi32>
    %c0_11 = arith.constant 0 : index
    %c0_12 = arith.constant 0 : index
    %22 = vector.load %arg5[%c0_11, %c0_12] : memref<8x32xi32, #tpu.memory_space<vmem>>, vector<8x32xi32>
    tpu.vector_store %arg5[%c0_11, %c0_12], %21 {strides = array<i32>} : memref<8x32xi32, #tpu.memory_space<vmem>>, vector<8x32xi32>,
    return
  }
  func.func @transform_0(%arg0: i32) -> (i32, i32) {
    %c0_i32 = arith.constant 0 : i32
    %c0_i32_0 = arith.constant 0 : i32
    return %arg0, %c0_i32 : i32, i32
  }
  func.func @transform_1(%arg0: i32) -> (i32, i32) {
    %c0_i32 = arith.constant 0 : i32
    %c0_i32_0 = arith.constant 0 : i32
    %c0_i32_1 = arith.constant 0 : i32
    return %c0_i32, %c0_i32_0 : i32, i32
  }
  func.func @transform_2(%arg0: i32) -> (i32, i32) {
    %c0_i32 = arith.constant 0 : i32
    %c0_i32_0 = arith.constant 0 : i32
    %c0_i32_1 = arith.constant 0 : i32
    return %c0_i32, %c0_i32_0 : i32, i32
  }
  func.func @transform_3(%arg0: i32) -> (i32, i32) {
    %c0_i32 = arith.constant 0 : i32
    %c0_i32_0 = arith.constant 0 : i32
    return %arg0, %c0_i32 : i32, i32
  }
  func.func @transform_4(%arg0: i32) -> (i32, i32) {
    %c0_i32 = arith.constant 0 : i32
    %c0_i32_0 = arith.constant 0 : i32
    return %arg0, %c0_i32 : i32, i32
  }
}

</mosaic_0001>

<bundles_post_ra>
// kernel: tpu_custom_call.1
= control target key start
LH: loop header
LB: loop body
LE: loop exit
PB: predicated region body
PF: predicated region fallthrough
CT: control target
= control target key end

     0   :  { %10 = vsyncpa [#allocation3], 0  ;;  %v302_v3 = vmov 0.0|0.0   ;;  %vm303_vm0 = vmmov 0   ;;  %v304_v6 = vmov 0.0   ;;  %s419_s0 = inlined_call_operand.vmem [shape: f32[8,128], index: 0, kind: input, shape index: {}]   ;;  %s420_s1 = inlined_call_operand.vmem [shape: f32[4,128], index: 1, kind: input, shape index: {}]   ;;  %s421_s2 = inlined_call_operand.vmem [shape: f32[128,32], index: 2, kind: input, shape index: {}]   ;;  %s422_s3 = inlined_call_operand.hbm [shape: f32[8,128], index: 3, kind: output, shape index: {0}]   ;;  %s423_s4 = inlined_call_operand.hbm [shape: s32[8,32], index: 4, kind: output, shape index: {1}]  }
   0x1   :  { %v46_v0 = vld [vmem:[%s421_s2] sm:$0xff]  ;;  %v47_v1 = vld [vmem:[%s421_s2 + $0x8] sm:$0xff]  ;;  %v48_v2 = vld [vmem:[%s421_s2 + $0x10] sm:$0xff]  ;;  %219 = vmatprep.subr.bf16.mxu0 %v302_v3  ;;  %216 = vmatprep.mubr.msk.f32.mxu0 %vm303_vm0, %v304_v6 }
   0x2   :  { %v220_v4 = vpack.c.bf16 %v47_v1, %v46_v0  ;;  %v49_v5 = vld [vmem:[%s421_s2 + $0x18] sm:$0xff]  ;;  %v50_v8 = vld [vmem:[%s421_s2 + $0x20] sm:$0xff]  ;;  %v51_v9 = vld [vmem:[%s421_s2 + $0x28] sm:$0xff] }
   0x3   :  { %v223_v7 = vpack.c.bf16 %v49_v5, %v48_v2  ;;  %v18_v10 = vld [vmem:[%s419_s0] sm:$0xff] }
   0x4   :  { %221 = vmatpush3.bf16.msra.mxu0 %v220_v4  ;;  %v163_v11 = vld [vmem:[%s420_s1] ss:$0 sm:$0xff] }
   0x5   :  { %222 = vmatprep.subr.bf16.mxu0 %v302_v3  ;;  %v27_v12 = vadd.f32 %v163_v11, %v18_v10 }
   0x6   :  { %11 = vsyncpa [#allocation5], 0  ;;  %v226_v13 = vpack.c.bf16 %v51_v9, %v50_v8  ;;  %v52_v14 = vld [vmem:[%s421_s2 + $0x30] sm:$0xff]  ;;  %v53_v15 = vld [vmem:[%s421_s2 + $0x38] sm:$0xff]  ;;  %s305_s30 = smov [#allocation2]  }
   0x7   :  { %252 = vtanh.f32 %v27_v12  ;;  %v229_v16 = vpack.c.bf16 %v53_v15, %v52_v14  ;;  %v54_v17 = vld [vmem:[%s421_s2 + $0x40] sm:$0xff]  ;;  %v55_v18 = vld [vmem:[%s421_s2 + $0x48] sm:$0xff]  ;;  %v56_v20 = vld [vmem:[%s421_s2 + $0x50] sm:$0xff]  ;;  %s141_s5 = sshll.u32 %s305_s30, 4  ;;  %s142_s5 = int_to_ptr.vmem [resolvable:$true] %s141_s5 }
   0x8   :  { %224 = vmatpush3.bf16.msra.mxu0 %v223_v7  ;;  %v232_v19 = vpack.c.bf16 %v55_v18, %v54_v17  ;;  %v57_v21 = vld [vmem:[%s421_s2 + $0x58] sm:$0xff]  ;;  %v164_v24 = vld [vmem:[%s420_s1 + $0x1] ss:$0 sm:$0xff]  ;;  %v59_v26 = vld [vmem:[%s421_s2 + $0x68] sm:$0xff]  ;;  %s254_s6 = scalar_lea.vmem %s142_s5, 128  ;;  %p259_p1 = scmp.lt.s32.totalorder %s142_s5, %s142_s5 }
   0x9   :  { %225 = vmatprep.subr.bf16.mxu0 %v302_v3  ;;  %v235_v23 = vpack.c.bf16 %v57_v21, %v56_v20  ;;  %v58_v25 = vld [vmem:[%s421_s2 + $0x60] sm:$0xff]  ;;  %v60_v30 = vld [vmem:[%s421_s2 + $0x70] sm:$0xff]  ;;  %v61_v31 = vld [vmem:[%s421_s2 + $0x78] sm:$0xff]  ;;  %p255_p0 = scmp.ne.s32.totalorder %s142_s5, %s254_s6  ;;  %p260_p2 = scmp.lt.s32.totalorder %s254_s6, %s254_s6 }
   0xa   :  { %v238_v28 = vpack.c.bf16 %v59_v26, %v58_v25  ;;  %v165_v29 = vld [vmem:[%s420_s1 + $0x2] ss:$0 sm:$0xff]  ;;  %v241_v33 = vpack.c.bf16 %v61_v31, %v60_v30  ;;  %v166_v35 = vld [vmem:[%s420_s1 + $0x3] ss:$0 sm:$0xff] }
   0xb   :  { %p261_p3 = por %p260_p2, %p259_p1 }
   0xc   :  { %227 = vmatpush3.bf16.msra.mxu0 %v226_v13 }
   0xd   :  { %228 = vmatprep.subr.bf16.mxu0 %v302_v3  ;;  %p262_p4 = pnand %p261_p3, %p255_p0 }
  0x10   :  { %230 = vmatpush3.bf16.msra.mxu0 %v229_v16 }
  0x11   :  { %231 = vmatprep.subr.bf16.mxu0 %v302_v3  ;;  %v253_v22 = vpop.eup %252 }
  0x12   :  { %v33_v27 = vmul.f32 %v253_v22, %v164_v24 }
  0x14   :  { %233 = vmatpush3.bf16.msra.mxu0 %v232_v19  ;;  %v38_v32 = vsub.f32 %v33_v27, %v165_v29 }
  0x15   :  { %234 = vmatprep.subr.bf16.mxu0 %v302_v3 }
  0x16   :  { %v243_v34 = vround.rtne.f32 %v38_v32 }
  0x18   :  { %236 = vmatpush3.bf16.msra.mxu0 %v235_v23  ;;  %v44_v36 = vmul.f32 %v243_v34, %v166_v35 }
  0x19   :  { %237 = vmatprep.subr.bf16.mxu0 %v302_v3 }
  0x1a   :  { %45 = vst [vmem:[#allocation2] sm:$0xff] %v44_v36 }
  0x1c   :  { %239 = vmatpush3.bf16.msra.mxu0 %v238_v28 }
  0x1d   :  { %240 = vmatprep.subr.bf16.mxu0 %v302_v3 }
  0x20   :  { %242 = vmatpush3.bf16.msra.mxu0 %v241_v33 }
  0x23   :  { %217 = vmatmul.mubr.f32.vlgmr.msra.gmra.mrb[0].mxu0 %v243_v34 }
  0x24   :  { %265 = shalt.err (!%p262_p4)
}
  0x25   :  { %s266_s8 = scalar_lea.hbm %s422_s3, 128 }
  0x26   :  { %p267_p5 = scmp.ne.s32.totalorder %s422_s3, %s266_s8  ;;  %p270_p6 = scmp.lt.u32.totalorder %s266_s8, %s422_s3 }
  0x28   :  { %p272_p7 = pnand %p270_p6, %p267_p5 }
  0x2a   :  { %275 = shalt.err (!%p272_p7)
}
  0x2b   :  { %144 = dma.vmem_to_hbm [thread:$0]  %s142_s5, 128, %s422_s3, [#allocation3]   ;;  %vm133_vm1 = vcmask 261120  }
  0x2c   :  { %s306_s13 = smov [#allocation4]  }
  0x2d   :  { %s151_s14 = sshll.u32 %s306_s13, 4  ;;  %s152_s14 = int_to_ptr.vmem [resolvable:$true] %s151_s14 }
  0x2e   :  { %s276_s15 = scalar_lea.vmem %s152_s14, 128  ;;  %p281_p9 = scmp.lt.s32.totalorder %s152_s14, %s152_s14 }
  0x2f   :  { %p277_p8 = scmp.ne.s32.totalorder %s152_s14, %s276_s15  ;;  %p282_p10 = scmp.lt.s32.totalorder %s276_s15, %s276_s15 }
  0x31   :  { %p283_p11 = por %p282_p10, %p281_p9 }
  0x33   :  { %p284_p12 = pnand %p283_p11, %p277_p8 }
  0xf6   :  { %v128_v37 = vpop.f32.mrb[0].mxu0 }
  0xf7   :  { %v129_v38 = vadd.f32 500.0, %v128_v37  ;;  %v218_v39 = vpop.f32.mrb[1].mxu0 }
  0xf9   :  { %v246_v40 = vcvt.f32.s32 %v129_v38 }
  0xfb   :  { %134 = vst.msk [vmem:[#allocation4] sm:$0xff] %vm133_vm1, %v246_v40 }
  0xfc   :  { %287 = shalt.err (!%p284_p12)
}
  0xfd   :  { %s288_s3 = scalar_lea.hbm %s423_s4, 128 }
  0xfe   :  { %p289_p13 = scmp.ne.s32.totalorder %s423_s4, %s288_s3  ;;  %p292_p0 = scmp.lt.u32.totalorder %s288_s3, %s423_s4 }
 0x100   :  { %p294_p1 = pnand %p292_p0, %p289_p13 }
 0x102   :  { %297 = shalt.err (!%p294_p1)
}
 0x103   :  { %154 = dma.vmem_to_hbm [thread:$0]  %s152_s14, 128, %s423_s4, [#allocation5]  }
 0x104   :  { %298 = dma.done.wait [#allocation3], 128  }
 0x105   :  { %299 = vsyncadd [#allocation3], 4294967168 }
 0x106   :  { %300 = dma.done.wait [#allocation5], 128  }
 0x107   :  { %301 = vsyncadd [#allocation5], 4294967168 }
 0x108   :  { %161 = vsyncpa [#allocation3], 1 }
 0x109   :  { %162 = vsyncpa [#allocation5], 1 }

</bundles_post_ra>
